<compile_context>
chip_gen: v6e
topology: v6e:2x2x1
jax: 0.10.0
libtpu: 0.0.40
codegen_flags: <defaults>
</compile_context>

<pallas_src>
import functools

import jax
import jax.numpy as jnp
from jax.experimental import pallas as pl
from jax.experimental.pallas import tpu as pltpu


def _mha_kernel(x_ref, wq_ref, wkv_ref, wo_ref, o_ref, kv_ref, ctx_ref, *,
                head_num, head_dim, q_tile, scale, compute_dtype):
    """One (batch, query_tile) grid point: fused QKV projection, per-head
    attention, and a single fused output projection for all heads."""
    qt = pl.program_id(1)
    E = head_num * head_dim
    cdt = compute_dtype

    # --- K|V projection: once per batch element, cached in VMEM across q tiles.
    @pl.when(qt == 0)
    def _():
        x_full = x_ref[...].astype(cdt)                                 # (T, E)
        kv_ref[...] = jnp.dot(x_full, wkv_ref[...].astype(cdt),
                              preferred_element_type=jnp.float32)       # (T, 2E)

    # --- Q projection for this query tile; scale folded into Q (scale = d/2,
    #     matching the PyTorch `** 1 / 2` operator-precedence bug).
    row0 = pl.multiple_of(qt * q_tile, q_tile)
    xq = x_ref[pl.ds(row0, q_tile), :].astype(cdt)                      # (tq, E)
    q_all = jnp.dot(xq, wq_ref[...].astype(cdt),
                    preferred_element_type=jnp.float32) * scale         # (tq, H*d)

    # --- per-head attention; ctx written into '(h d)'-ordered columns.
    for h in range(head_num):
        lo, hi = h * head_dim, (h + 1) * head_dim
        q_h = q_all[:, lo:hi]                                           # (tq, d) f32
        k_h = kv_ref[:, lo:hi]                                          # (T, d)  f32
        v_h = kv_ref[:, E + lo:E + hi]                                  # (T, d)  f32

        # scores: contract the last dims of both operands (no explicit k^T).
        energy = jax.lax.dot_general(
            q_h.astype(cdt), k_h.astype(cdt),
            dimension_numbers=(((1,), (1,)), ((), ())),
            preferred_element_type=jnp.float32)                         # (tq, T)

        # TODO(synk): optional `mask` argument (masked_fill with -inf) is not
        # wired in; the forward() default path (mask=None) is implemented.

        # row softmax in f32; denominator via EUP approximate reciprocal.
        m = jnp.max(energy, axis=-1, keepdims=True)
        e = jnp.exp(energy - m)
        attn = e * pl.reciprocal(jnp.sum(e, axis=-1, keepdims=True), approx=True)

        ctx_ref[:, lo:hi] = jnp.dot(attn.astype(cdt), v_h.astype(cdt),
                                    preferred_element_type=jnp.float32)  # (tq, d)

    # --- single fused output projection for all heads, one lane-dense store.
    o_ref[...] = jnp.dot(ctx_ref[...].astype(cdt), wo_ref[...].astype(cdt),
                         preferred_element_type=jnp.float32).astype(o_ref.dtype)


def multi_head_attention(x, w_qkv, w_out, head_num, *, q_tile=None,
                         compute_dtype=jnp.float32, vmem_limit_bytes=None):
    """x: (B, T, E) f32; w_qkv: (3E, E); w_out: (E, E) (PyTorch nn.Linear layout).
    Returns (B, T, E) f32. compute_dtype=jnp.bfloat16 casts matmul inputs to bf16
    with f32 accumulation (softmax stays f32)."""
    B, T, E = x.shape
    assert E % head_num == 0
    d = E // head_num
    scale = (E // head_num) ** 1 / 2   # == d / 2, exactly as in the PyTorch module

    # --- weight pre-permutation (plain JAX, done once; weights stay VMEM-resident)
    # qkv output feature order follows rearrange 'b t (d k h)':
    #   flat index o = dd*3*H + kk*H + hh
    w_r = w_qkv.reshape(d, 3, head_num, E)                              # (d, k, h, E)
    wq = jnp.transpose(w_r[:, 0], (2, 1, 0)).reshape(E, head_num * d)   # (E, H*d)
    wk = jnp.transpose(w_r[:, 1], (2, 1, 0)).reshape(E, head_num * d)
    wv = jnp.transpose(w_r[:, 2], (2, 1, 0)).reshape(E, head_num * d)
    wkv = jnp.concatenate([wk, wv], axis=1)                             # (E, 2*H*d)
    # rearrange(ctx, 'b h t d -> b t (h d)') @ w_out.T  ==  ctx_concat @ w_out.T
    wo = w_out.T                                                        # (E, E)

    # --- query tiling (bounds the (tq, T) score matrix; no-op for small T).
    if q_tile is None:
        q_tile = T
        for cand in (256, 128):
            if T > cand and T % cand == 0:
                q_tile = cand
                break
    assert T % q_tile == 0
    n_qt = T // q_tile

    kernel = functools.partial(
        _mha_kernel, head_num=head_num, head_dim=d, q_tile=q_tile,
        scale=scale, compute_dtype=compute_dtype)

    return pl.pallas_call(
        kernel,
        out_shape=jax.ShapeDtypeStruct((B, T, E), jnp.float32),
        grid_spec=pltpu.PrefetchScalarGridSpec(
            num_scalar_prefetch=0,
            grid=(B, n_qt),
            in_specs=[
                # x: full token block per batch element (constant across q tiles,
                # so it is not re-DMA'd within a batch element); leading batch
                # dim squeezed out of the kernel view.
                pl.BlockSpec((None, T, E), lambda b, qt: (b, 0, 0)),
                # weights: full-array blocks with constant index_map -> loaded
                # once and kept VMEM-resident for the entire grid.
                pl.BlockSpec((E, head_num * d), lambda b, qt: (0, 0)),       # wq
                pl.BlockSpec((E, 2 * head_num * d), lambda b, qt: (0, 0)),   # wkv
                pl.BlockSpec((E, E), lambda b, qt: (0, 0)),                  # wo
            ],
            out_specs=pl.BlockSpec((None, q_tile, E), lambda b, qt: (b, qt, 0)),
            scratch_shapes=[
                pltpu.VMEM((T, 2 * head_num * d), jnp.float32),   # K|V cache
                pltpu.VMEM((q_tile, E), jnp.float32),             # ctx (h d) slab
            ],
        ),
        compiler_params=pltpu.CompilerParams(
            # q-tile axis must stay sequential ("arbitrary"): the K|V scratch is
            # computed at qt == 0 and reused by later q tiles of the same batch.
            dimension_semantics=("parallel", "arbitrary"),
            vmem_limit_bytes=vmem_limit_bytes,
        ),
    )(x, wq, wkv, wo)


def _reference_mha(x, w_qkv, w_out, head_num):
    """Pure-JAX transcription of the PyTorch forward (mask=None)."""
    B, T, E = x.shape
    d = E // head_num
    scale = (E // head_num) ** 1 / 2
    qkv = x @ w_qkv.T                                    # (B, T, 3E)
    qkv_r = qkv.reshape(B, T, d, 3, head_num)            # 'b t (d k h)'
    q = jnp.transpose(qkv_r[..., 0, :], (0, 3, 1, 2))    # (B, H, T, d)
    k = jnp.transpose(qkv_r[..., 1, :], (0, 3, 1, 2))
    v = jnp.transpose(qkv_r[..., 2, :], (0, 3, 1, 2))
    energy = jnp.einsum('bhid,bhjd->bhij', q, k) * scale
    attn = jax.nn.softmax(energy, axis=-1)
    ctx = jnp.einsum('bhij,bhjd->bhid', attn, v)
    ctx = jnp.transpose(ctx, (0, 2, 1, 3)).reshape(B, T, E)
    return ctx @ w_out.T


if __name__ == "__main__":
    B, T, E, H = 2, 8, 32, 4

    key = jax.random.PRNGKey(0)
    kx, kqkv, kout = jax.random.split(key, 3)

    x = jax.random.normal(kx, (B, T, E), dtype=jnp.float32)
    # Deterministic "nn.Linear" weights (PyTorch layout: (out_features, in_features))
    w_qkv = jax.random.normal(kqkv, (3 * E, E), dtype=jnp.float32) * 0.05
    w_out = jax.random.normal(kout, (E, E), dtype=jnp.float32) * 0.05

    out = multi_head_attention(x, w_qkv, w_out, H)
    out = jax.block_until_ready(out)
    ref = _reference_mha(x, w_qkv, w_out, H)

    assert out.shape == (B, T, E)
    # f32 path: only deviation from the exact reference is the approximate (EUP)
    # reciprocal used for the softmax denominator, hence the slightly looser tol.
    assert jnp.allclose(out, ref, rtol=2e-3, atol=1e-3), "f32 kernel mismatch vs reference"

    # bf16 matmul inputs / f32 accumulation (v5e/v6e/v7x MXU-peak path); softmax f32.
    out_bf16 = jax.block_until_ready(
        multi_head_attention(x, w_qkv, w_out, H, compute_dtype=jnp.bfloat16))
    assert jnp.allclose(out_bf16, ref, rtol=5e-2, atol=1e-2), "bf16 kernel mismatch vs reference"

    print("KERNEL_OK")
</pallas_src>

<mosaic_0001>
module attributes {stable_mosaic.version = 11 : i64} {
  func.func @_mha_kernel(%arg0: i32, %arg1: i32, %arg2: memref<1x8x32xf32, #tpu.memory_space<vmem>>, %arg3: memref<32x32xf32, #tpu.memory_space<vmem>>, %arg4: memref<32x64xf32, #tpu.memory_space<vmem>>, %arg5: memref<32x32xf32, #tpu.memory_space<vmem>>, %arg6: memref<1x8x32xf32, #tpu.memory_space<vmem>>, %arg7: memref<8x64xf32, #tpu.memory_space<vmem>>, %arg8: memref<8x32xf32, #tpu.memory_space<vmem>>) attributes {dimension_semantics = [#tpu.dimension_semantics<parallel>, #tpu.dimension_semantics<arbitrary>], iteration_bounds = array<i64: 2, 1>, scalar_prefetch = 0 : i64, scratch_operands = 2 : i64, tpu.core_type = #tpu.core_type<tc>, window_params = [{transform_indices = @transform_0, window_bounds = array<i64: 1, 8, 32>}, {pipeline_mode = #tpu.pipeline_mode<synchronous>, transform_indices = @transform_1, window_bounds = array<i64: 32, 32>}, {pipeline_mode = #tpu.pipeline_mode<synchronous>, transform_indices = @transform_2, window_bounds = array<i64: 32, 64>}, {pipeline_mode = #tpu.pipeline_mode<synchronous>, transform_indices = @transform_3, window_bounds = array<i64: 32, 32>}, {transform_indices = @transform_4, window_bounds = array<i64: 1, 8, 32>}]} {
    %c0_i32 = arith.constant 0 : i32
    %0 = arith.cmpi eq, %arg1, %c0_i32 : i32
    %1 = arith.extui %0 : i1 to i32
    %c0_i32_0 = arith.constant 0 : i32
    %2 = arith.cmpi ne, %1, %c0_i32_0 : i32
    scf.if %2 {
      %c0_46 = arith.constant 0 : index
      %c0_47 = arith.constant 0 : index
      %c0_48 = arith.constant 0 : index
      %82 = vector.load %arg2[%c0_46, %c0_47, %c0_48] : memref<1x8x32xf32, #tpu.memory_space<vmem>>, vector<1x8x32xf32>
      %83 = vector.shape_cast %82 : vector<1x8x32xf32> to vector<8x32xf32>
      %c0_49 = arith.constant 0 : index
      %c0_50 = arith.constant 0 : index
      %84 = vector.load %arg4[%c0_49, %c0_50] : memref<32x64xf32, #tpu.memory_space<vmem>>, vector<32x64xf32>
      %cst_51 = arith.constant dense<0.000000e+00> : vector<8x64xf32>
      %85 = tpu.matmul %83, %84, %cst_51 {dimension_numbers = #tpu.dot_dimension_numbers<[1], [0], [0], [1], [0, 0, 1, 1], [], []>} : vector<8x32xf32>, vector<32x64xf32>, vector<8x64xf32> -> vector<8x64xf32>
      %c0_52 = arith.constant 0 : index
      %c0_53 = arith.constant 0 : index
      %86 = vector.load %arg7[%c0_52, %c0_53] : memref<8x64xf32, #tpu.memory_space<vmem>>, vector<8x64xf32>
      tpu.vector_store %arg7[%c0_52, %c0_53], %85 {strides = array<i32>} : memref<8x64xf32, #tpu.memory_space<vmem>>, vector<8x64xf32>,
    } else {
    }
    %c8_i32 = arith.constant 8 : i32
    %3 = arith.muli %arg1, %c8_i32 : i32
    %4 = tpu.assume_multiple %3, 8 : i32
    %c0 = arith.constant 0 : index
    %5 = arith.index_cast %4 : i32 to index
    %c0_1 = arith.constant 0 : index
    %6 = vector.load %arg2[%c0, %5, %c0_1] : memref<1x8x32xf32, #tpu.memory_space<vmem>>, vector<1x8x32xf32>
    %7 = vector.shape_cast %6 : vector<1x8x32xf32> to vector<8x32xf32>
    %c0_2 = arith.constant 0 : index
    %c0_3 = arith.constant 0 : index
    %8 = vector.load %arg3[%c0_2, %c0_3] : memref<32x32xf32, #tpu.memory_space<vmem>>, vector<32x32xf32>
    %cst = arith.constant dense<0.000000e+00> : vector<8x32xf32>
    %9 = tpu.matmul %7, %8, %cst {dimension_numbers = #tpu.dot_dimension_numbers<[1], [0], [0], [1], [0, 0, 1, 1], [], []>} : vector<8x32xf32>, vector<32x32xf32>, vector<8x32xf32> -> vector<8x32xf32>
    %cst_4 = arith.constant 4.000000e+00 : f32
    %10 = vector.broadcast %cst_4 : f32 to vector<8x32xf32>
    %11 = arith.mulf %9, %10 : vector<8x32xf32>
    %12 = vector.extract_strided_slice %11 {offsets = [0, 0], sizes = [8, 8], strides = [1, 1]} : vector<8x32xf32> to vector<8x8xf32>
    %c0_5 = arith.constant 0 : index
    %c0_6 = arith.constant 0 : index
    %13 = vector.load %arg7[%c0_5, %c0_6] : memref<8x64xf32, #tpu.memory_space<vmem>>, vector<8x8xf32>
    %c0_7 = arith.constant 0 : index
    %c32 = arith.constant 32 : index
    %14 = vector.load %arg7[%c0_7, %c32] : memref<8x64xf32, #tpu.memory_space<vmem>>, vector<8x8xf32>
    %cst_8 = arith.constant dense<0.000000e+00> : vector<8x8xf32>
    %15 = tpu.matmul %12, %13, %cst_8 {dimension_numbers = #tpu.dot_dimension_numbers<[1], [1], [0], [0], [0, 0, 1, 0], [], []>} : vector<8x8xf32>, vector<8x8xf32>, vector<8x8xf32> -> vector<8x8xf32>
    %cst_9 = arith.constant dense<0xFF800000> : vector<8xf32>
    %16 = vector.multi_reduction <maximumf>, %15, %cst_9 [1] : vector<8x8xf32> to vector<8xf32>
    %17 = vector.shape_cast %16 : vector<8xf32> to vector<8x1xf32>
    %18 = vector.broadcast %17 : vector<8x1xf32> to vector<8x8xf32>
    %19 = arith.subf %15, %18 : vector<8x8xf32>
    %20 = math.exp %19 : vector<8x8xf32>
    %cst_10 = arith.constant dense<0.000000e+00> : vector<8xf32>
    %21 = vector.multi_reduction <add>, %20, %cst_10 [1] : vector<8x8xf32> to vector<8xf32>
    %22 = vector.shape_cast %21 : vector<8xf32> to vector<8x1xf32>
    %23 = tpu.reciprocal %22 {approx = true} : vector<8x1xf32> -> vector<8x1xf32>
    %24 = vector.broadcast %23 : vector<8x1xf32> to vector<8x8xf32>
    %25 = arith.mulf %20, %24 : vector<8x8xf32>
    %cst_11 = arith.constant dense<0.000000e+00> : vector<8x8xf32>
    %26 = tpu.matmul %25, %14, %cst_11 {dimension_numbers = #tpu.dot_dimension_numbers<[1], [0], [0], [1], [0, 0, 1, 1], [], []>} : vector<8x8xf32>, vector<8x8xf32>, vector<8x8xf32> -> vector<8x8xf32>
    %c0_12 = arith.constant 0 : index
    %c0_13 = arith.constant 0 : index
    %27 = vector.load %arg8[%c0_12, %c0_13] : memref<8x32xf32, #tpu.memory_space<vmem>>, vector<8x8xf32>
    tpu.vector_store %arg8[%c0_12, %c0_13], %26 {strides = array<i32>} : memref<8x32xf32, #tpu.memory_space<vmem>>, vector<8x8xf32>,
    %28 = vector.extract_strided_slice %11 {offsets = [0, 8], sizes = [8, 8], strides = [1, 1]} : vector<8x32xf32> to vector<8x8xf32>
    %c0_14 = arith.constant 0 : index
    %c8 = arith.constant 8 : index
    %29 = vector.load %arg7[%c0_14, %c8] : memref<8x64xf32, #tpu.memory_space<vmem>>, vector<8x8xf32>
    %c0_15 = arith.constant 0 : index
    %c40 = arith.constant 40 : index
    %30 = vector.load %arg7[%c0_15, %c40] : memref<8x64xf32, #tpu.memory_space<vmem>>, vector<8x8xf32>
    %cst_16 = arith.constant dense<0.000000e+00> : vector<8x8xf32>
    %31 = tpu.matmul %28, %29, %cst_16 {dimension_numbers = #tpu.dot_dimension_numbers<[1], [1], [0], [0], [0, 0, 1, 0], [], []>} : vector<8x8xf32>, vector<8x8xf32>, vector<8x8xf32> -> vector<8x8xf32>
    %cst_17 = arith.constant dense<0xFF800000> : vector<8xf32>
    %32 = vector.multi_reduction <maximumf>, %31, %cst_17 [1] : vector<8x8xf32> to vector<8xf32>
    %33 = vector.shape_cast %32 : vector<8xf32> to vector<8x1xf32>
    %34 = vector.broadcast %33 : vector<8x1xf32> to vector<8x8xf32>
    %35 = arith.subf %31, %34 : vector<8x8xf32>
    %36 = math.exp %35 : vector<8x8xf32>
    %cst_18 = arith.constant dense<0.000000e+00> : vector<8xf32>
    %37 = vector.multi_reduction <add>, %36, %cst_18 [1] : vector<8x8xf32> to vector<8xf32>
    %38 = vector.shape_cast %37 : vector<8xf32> to vector<8x1xf32>
    %39 = tpu.reciprocal %38 {approx = true} : vector<8x1xf32> -> vector<8x1xf32>
    %40 = vector.broadcast %39 : vector<8x1xf32> to vector<8x8xf32>
    %41 = arith.mulf %36, %40 : vector<8x8xf32>
    %cst_19 = arith.constant dense<0.000000e+00> : vector<8x8xf32>
    %42 = tpu.matmul %41, %30, %cst_19 {dimension_numbers = #tpu.dot_dimension_numbers<[1], [0], [0], [1], [0, 0, 1, 1], [], []>} : vector<8x8xf32>, vector<8x8xf32>, vector<8x8xf32> -> vector<8x8xf32>
    %c0_20 = arith.constant 0 : index
    %c8_21 = arith.constant 8 : index
    %43 = vector.load %arg8[%c0_20, %c8_21] : memref<8x32xf32, #tpu.memory_space<vmem>>, vector<8x8xf32>
    tpu.vector_store %arg8[%c0_20, %c8_21], %42 {strides = array<i32>} : memref<8x32xf32, #tpu.memory_space<vmem>>, vector<8x8xf32>,
    %44 = vector.extract_strided_slice %11 {offsets = [0, 16], sizes = [8, 8], strides = [1, 1]} : vector<8x32xf32> to vector<8x8xf32>
    %c0_22 = arith.constant 0 : index
    %c16 = arith.constant 16 : index
    %45 = vector.load %arg7[%c0_22, %c16] : memref<8x64xf32, #tpu.memory_space<vmem>>, vector<8x8xf32>
    %c0_23 = arith.constant 0 : index
    %c48 = arith.constant 48 : index
    %46 = vector.load %arg7[%c0_23, %c48] : memref<8x64xf32, #tpu.memory_space<vmem>>, vector<8x8xf32>
    %cst_24 = arith.constant dense<0.000000e+00> : vector<8x8xf32>
    %47 = tpu.matmul %44, %45, %cst_24 {dimension_numbers = #tpu.dot_dimension_numbers<[1], [1], [0], [0], [0, 0, 1, 0], [], []>} : vector<8x8xf32>, vector<8x8xf32>, vector<8x8xf32> -> vector<8x8xf32>
    %cst_25 = arith.constant dense<0xFF800000> : vector<8xf32>
    %48 = vector.multi_reduction <maximumf>, %47, %cst_25 [1] : vector<8x8xf32> to vector<8xf32>
    %49 = vector.shape_cast %48 : vector<8xf32> to vector<8x1xf32>
    %50 = vector.broadcast %49 : vector<8x1xf32> to vector<8x8xf32>
    %51 = arith.subf %47, %50 : vector<8x8xf32>
    %52 = math.exp %51 : vector<8x8xf32>
    %cst_26 = arith.constant dense<0.000000e+00> : vector<8xf32>
    %53 = vector.multi_reduction <add>, %52, %cst_26 [1] : vector<8x8xf32> to vector<8xf32>
    %54 = vector.shape_cast %53 : vector<8xf32> to vector<8x1xf32>
    %55 = tpu.reciprocal %54 {approx = true} : vector<8x1xf32> -> vector<8x1xf32>
    %56 = vector.broadcast %55 : vector<8x1xf32> to vector<8x8xf32>
    %57 = arith.mulf %52, %56 : vector<8x8xf32>
    %cst_27 = arith.constant dense<0.000000e+00> : vector<8x8xf32>
    %58 = tpu.matmul %57, %46, %cst_27 {dimension_numbers = #tpu.dot_dimension_numbers<[1], [0], [0], [1], [0, 0, 1, 1], [], []>} : vector<8x8xf32>, vector<8x8xf32>, vector<8x8xf32> -> vector<8x8xf32>
    %c0_28 = arith.constant 0 : index
    %c16_29 = arith.constant 16 : index
    %59 = vector.load %arg8[%c0_28, %c16_29] : memref<8x32xf32, #tpu.memory_space<vmem>>, vector<8x8xf32>
    tpu.vector_store %arg8[%c0_28, %c16_29], %58 {strides = array<i32>} : memref<8x32xf32, #tpu.memory_space<vmem>>, vector<8x8xf32>,
    %60 = vector.extract_strided_slice %11 {offsets = [0, 24], sizes = [8, 8], strides = [1, 1]} : vector<8x32xf32> to vector<8x8xf32>
    %c0_30 = arith.constant 0 : index
    %c24 = arith.constant 24 : index
    %61 = vector.load %arg7[%c0_30, %c24] : memref<8x64xf32, #tpu.memory_space<vmem>>, vector<8x8xf32>
    %c0_31 = arith.constant 0 : index
    %c56 = arith.constant 56 : index
    %62 = vector.load %arg7[%c0_31, %c56] : memref<8x64xf32, #tpu.memory_space<vmem>>, vector<8x8xf32>
    %cst_32 = arith.constant dense<0.000000e+00> : vector<8x8xf32>
    %63 = tpu.matmul %60, %61, %cst_32 {dimension_numbers = #tpu.dot_dimension_numbers<[1], [1], [0], [0], [0, 0, 1, 0], [], []>} : vector<8x8xf32>, vector<8x8xf32>, vector<8x8xf32> -> vector<8x8xf32>
    %cst_33 = arith.constant dense<0xFF800000> : vector<8xf32>
    %64 = vector.multi_reduction <maximumf>, %63, %cst_33 [1] : vector<8x8xf32> to vector<8xf32>
    %65 = vector.shape_cast %64 : vector<8xf32> to vector<8x1xf32>
    %66 = vector.broadcast %65 : vector<8x1xf32> to vector<8x8xf32>
    %67 = arith.subf %63, %66 : vector<8x8xf32>
    %68 = math.exp %67 : vector<8x8xf32>
    %cst_34 = arith.constant dense<0.000000e+00> : vector<8xf32>
    %69 = vector.multi_reduction <add>, %68, %cst_34 [1] : vector<8x8xf32> to vector<8xf32>
    %70 = vector.shape_cast %69 : vector<8xf32> to vector<8x1xf32>
    %71 = tpu.reciprocal %70 {approx = true} : vector<8x1xf32> -> vector<8x1xf32>
    %72 = vector.broadcast %71 : vector<8x1xf32> to vector<8x8xf32>
    %73 = arith.mulf %68, %72 : vector<8x8xf32>
    %cst_35 = arith.constant dense<0.000000e+00> : vector<8x8xf32>
    %74 = tpu.matmul %73, %62, %cst_35 {dimension_numbers = #tpu.dot_dimension_numbers<[1], [0], [0], [1], [0, 0, 1, 1], [], []>} : vector<8x8xf32>, vector<8x8xf32>, vector<8x8xf32> -> vector<8x8xf32>
    %c0_36 = arith.constant 0 : index
    %c24_37 = arith.constant 24 : index
    %75 = vector.load %arg8[%c0_36, %c24_37] : memref<8x32xf32, #tpu.memory_space<vmem>>, vector<8x8xf32>
    tpu.vector_store %arg8[%c0_36, %c24_37], %74 {strides = array<i32>} : memref<8x32xf32, #tpu.memory_space<vmem>>, vector<8x8xf32>,
    %c0_38 = arith.constant 0 : index
    %c0_39 = arith.constant 0 : index
    %76 = vector.load %arg8[%c0_38, %c0_39] : memref<8x32xf32, #tpu.memory_space<vmem>>, vector<8x32xf32>
    %c0_40 = arith.constant 0 : index
    %c0_41 = arith.constant 0 : index
    %77 = vector.load %arg5[%c0_40, %c0_41] : memref<32x32xf32, #tpu.memory_space<vmem>>, vector<32x32xf32>
    %cst_42 = arith.constant dense<0.000000e+00> : vector<8x32xf32>
    %78 = tpu.matmul %76, %77, %cst_42 {dimension_numbers = #tpu.dot_dimension_numbers<[1], [0], [0], [1], [0, 0, 1, 1], [], []>} : vector<8x32xf32>, vector<32x32xf32>, vector<8x32xf32> -> vector<8x32xf32>
    %c0_43 = arith.constant 0 : index
    %c0_44 = arith.constant 0 : index
    %c0_45 = arith.constant 0 : index
    %79 = vector.load %arg6[%c0_43, %c0_44, %c0_45] : memref<1x8x32xf32, #tpu.memory_space<vmem>>, vector<1x8x32xf32>
    %80 = vector.shape_cast %79 : vector<1x8x32xf32> to vector<8x32xf32>
    %81 = vector.shape_cast %78 : vector<8x32xf32> to vector<1x8x32xf32>
    tpu.vector_store %arg6[%c0_43, %c0_44, %c0_45], %81 {strides = array<i32>} : memref<1x8x32xf32, #tpu.memory_space<vmem>>, vector<1x8x32xf32>,
    return
  }
  func.func @transform_0(%arg0: i32, %arg1: i32) -> (i32, i32, i32) {
    %c0_i32 = arith.constant 0 : i32
    %c0_i32_0 = arith.constant 0 : i32
    %c0_i32_1 = arith.constant 0 : i32
    return %arg0, %c0_i32, %c0_i32_0 : i32, i32, i32
  }
  func.func @transform_1(%arg0: i32, %arg1: i32) -> (i32, i32) {
    %c0_i32 = arith.constant 0 : i32
    %c0_i32_0 = arith.constant 0 : i32
    %c0_i32_1 = arith.constant 0 : i32
    return %c0_i32, %c0_i32_0 : i32, i32
  }
  func.func @transform_2(%arg0: i32, %arg1: i32) -> (i32, i32) {
    %c0_i32 = arith.constant 0 : i32
    %c0_i32_0 = arith.constant 0 : i32
    %c0_i32_1 = arith.constant 0 : i32
    return %c0_i32, %c0_i32_0 : i32, i32
  }
  func.func @transform_3(%arg0: i32, %arg1: i32) -> (i32, i32) {
    %c0_i32 = arith.constant 0 : i32
    %c0_i32_0 = arith.constant 0 : i32
    %c0_i32_1 = arith.constant 0 : i32
    return %c0_i32, %c0_i32_0 : i32, i32
  }
  func.func @transform_4(%arg0: i32, %arg1: i32) -> (i32, i32, i32) {
    %c0_i32 = arith.constant 0 : i32
    %c0_i32_0 = arith.constant 0 : i32
    return %arg0, %arg1, %c0_i32 : i32, i32, i32
  }
}

</mosaic_0001>

<bundles_post_ra>
// kernel: tpu_custom_call.1
= control target key start
LH: loop header
LB: loop body
LE: loop exit
PB: predicated region body
PF: predicated region fallthrough
CT: control target
= control target key end

     0   :  { %9 = vsyncpa [#allocation5], 0  ;;  %s2107_s0 = inlined_call_operand.hbm [shape: f32[2,8,32], index: 0, kind: input, shape index: {}]   ;;  %s2108_s1 = inlined_call_operand.hbm [shape: f32[32,32], index: 1, kind: input, shape index: {}]   ;;  %s2109_s2 = inlined_call_operand.hbm [shape: f32[32,64], index: 2, kind: input, shape index: {}]   ;;  %s2110_s3 = inlined_call_operand.hbm [shape: f32[32,32], index: 3, kind: input, shape index: {}]   ;;  %s2111_s4 = inlined_call_operand.hbm [shape: f32[2,8,32], index: 4, kind: output, shape index: {}]  }
   0x1   :  { %11 = vsyncpa [#allocation5 + $0x1], 0 }
   0x2   :  { %12 = vsyncpa [#allocation8], 0 }
   0x3   :  { %13 = vsyncpa [#allocation11], 0 }
   0x4   :  { %14 = vsyncpa [#allocation6], 0 }
   0x5   :  { %16 = vsyncpa [#allocation6 + $0x1], 0  ;;  %s1828_s15 = smov 0   ;;  %s1830_s16 = smov 0  }
   0x6   :  { %s1832_s17 = smov 0   ;;  %s1834_s18 = smov 0  }
   0x7   :  { %s1836_s19 = smov 0   ;;  %s1838_s20 = smov 0  }
   0x8 LB: > { %s1327_s21 = sadd.s32 4294967295, %s1782_s20   ;;  %s1328_s22 = sadd.s32 4294967294, %s1782_s20   ;;  %s1782_s20 = sphi %s1838_s20, %s22_s20   ;;  %s1778_s19 = sphi %s1836_s19, %s2133_s19   ;;  %s1774_s18 = sphi %s1834_s18, %s2132_s18   ;;  %s1770_s17 = sphi %s1832_s17, %s2131_s17   ;;  %s1766_s16 = sphi %s1830_s16, %s2130_s16   ;;  %s1762_s15 = sphi %s1828_s15, %s2129_s15  }
   0x9   : > { %p54_p0 = scmp.ne.s32.totalorder %s1766_s16, %s1762_s15  ;;  %p1862_p1 = scmp.eq.s32.totalorder %s1327_s21, 0 }
   0xa   : > { %p1866_p2 = scmp.eq.s32.totalorder %s1327_s21, 1  ;;  %p149_p3 = scmp.eq.s32.totalorder %s1328_s22, 1 }
   0xb   : > { %s2116_s23 = scalar_select %p1862_p1, 1, 0 }
   0xc   : > { %p1872_p4 = por %p1862_p1, %p54_p0  ;;  %p1329_p5 = scmp.ge.s32.totalorder %s1782_s20, 1 }
   0xd   : > { %p1877_p6 = por %p149_p3, %p54_p0  ;;  %p156_p7 = scmp.lt.s32.totalorder %s1782_s20, 3 }
   0xe   : > { %s2118_s25 = scalar_select %p1872_p4, 1, 0 }
   0xf   : > { %s2119_s26 = scalar_select %p1877_p6, 1, 0 }
  0x10   : > { %p1882_p8 = pnand %p1329_p5, %p156_p7  ;;  %s1784_s28 = smov [#allocation7]  }
  0x11   : > { %s168_s29 = sshll.u32 %s1784_s28, 4  ;;  %s1785_s5 = smov [#allocation9]   ;;  %s169_s29 = int_to_ptr.vmem [resolvable:$true] %s168_s29 }
  0x12   : > { %s2120_s27 = scalar_select %p1882_p8, 1, 0 }
  0x13   : > { %p1481_p9 = pneg %p1882_p8  ;;  %s181_s6 = sshll.u32 %s1785_s5, 4  ;;  %s182_s6 = int_to_ptr.vmem [resolvable:$true] %s181_s6 }
  0x14   : > { %s1786_s7 = smov [#allocation10]   ;;  %s1599_s9 = scalar_lea.vmem %s169_s29, 512 }
  0x15   : > { %p1891_p11 = pnand %p1481_p9, %p1862_p1  ;;  %s194_s8 = sshll.u32 %s1786_s7, 4  ;;  %s195_s8 = int_to_ptr.vmem [resolvable:$true] %s194_s8 }
  0x16   : > { %p1600_p13 = scmp.ne.s32.totalorder %s169_s29, %s1599_s9  ;;  %p1607_p5 = scmp.lt.s32.totalorder %s169_s29, %s169_s29 }
  0x17   : > { %p1590_p12 = pneg %p1891_p11  ;;  %p1608_p7 = scmp.lt.s32.totalorder %s1599_s9, %s1599_s9 }
  0x19   : > { %p1602_p0 = pnand %p1600_p13, %p1590_p12  ;;  %p1609_p9 = por %p1608_p7, %p1607_p5 }
  0x1b   : > { %p1603_p3 = pneg %p1602_p0 }
  0x1d   : > { %p1610_p10 = pnand %p1609_p9, %p1603_p3 }
  0x1f   : > { %1613 = shalt.err (!%p1610_p10)
}
  0x20   : > { %s1787_s10 = smov 128   ;;  %s1788_s11 = smov 8  }
  0x21   : > { %1484 = dma.hbm_to_vmem [thread:$0]  (!%p1891_p11), %s2108_s1, 512, %s169_s29, [#allocation8], %s1787_s10, %s1787_s10, %s1788_s11  }
  0x22   : > { %s1625_s14 = scalar_lea.vmem %s182_s6, 512  ;;  %p1633_p1 = scmp.lt.s32.totalorder %s182_s6, %s182_s6 }
  0x23   : > { %p1626_p6 = scmp.ne.s32.totalorder %s182_s6, %s1625_s14  ;;  %p1634_p4 = scmp.lt.s32.totalorder %s1625_s14, %s1625_s14 }
  0x25   : > { %p1628_p13 = pnand %p1626_p6, %p1590_p12  ;;  %p1635_p5 = por %p1634_p4, %p1633_p1 }
  0x27   : > { %p1629_p0 = pneg %p1628_p13 }
  0x29   : > { %p1636_p3 = pnand %p1635_p5, %p1629_p0 }
  0x2b   : > { %1639 = shalt.err (!%p1636_p3)
}
  0x2c   : > { %1487 = dma.hbm_to_vmem [thread:$0]  (!%p1891_p11), %s2109_s2, 512, %s182_s6, [#allocation8], %s1787_s10, %s1787_s10, %s1788_s11  }
  0x2d   : > { %s1651_s28 = scalar_lea.vmem %s195_s8, 512  ;;  %p1659_p9 = scmp.lt.s32.totalorder %s195_s8, %s195_s8 }
  0x2e   : > { %p1652_p10 = scmp.ne.s32.totalorder %s195_s8, %s1651_s28  ;;  %p1660_p13 = scmp.lt.s32.totalorder %s1651_s28, %s1651_s28 }
  0x30   : > { %p1654_p7 = pnand %p1652_p10, %p1590_p12  ;;  %p1661_p8 = por %p1660_p13, %p1659_p9 }
  0x32   : > { %p1655_p6 = pneg %p1654_p7 }
  0x34   : > { %p1662_p1 = pnand %p1661_p8, %p1655_p6 }
  0x36   : > { %1665 = shalt.err (!%p1662_p1)
}
  0x37   : > { %1490 = dma.hbm_to_vmem [thread:$0]  (!%p1891_p11), %s2110_s3, 512, %s195_s8, [#allocation11], %s1787_s10, %s1787_s10, %s1788_s11  }
  0x38   : > { %s41_s6 = sadd.s32 1, %s1770_s17  ;;  %s34_s7 = sadd.s32 1, %s1778_s19 }
  0x39   : > { %p48_p4 = scmp.ne.s32.totalorder %s1770_s17, %s1766_s16  ;;  %p36_p8 = scmp.ge.s32.totalorder %s34_s7, 2 }
  0x3a   : > { %p49_p12 = scmp.eq.s32.totalorder %s1782_s20, 0  ;;  %p1502_p5 = scmp.lt.s32.totalorder %s1782_s20, 2 }
  0x3b   : > { %p1928_p0 = por %p1866_p2, %p48_p4  ;;  %s2135_s7 = smov (%p36_p8, %s34_s7), 0 }
  0x3c   : > { %p50_p3 = por %p49_p12, %p48_p4  ;;  %s208_s9 = sand.u32 1, %s1770_s17  }
  0x3d   : > { %s38_s12 = ssub.s32 %s1778_s19, %s2135_s7  ;;  %s1334_s8 = sshll.u32 %s208_s9, 3 }
  0x3e   : > { %p39_p10 = scmp.eq.s32.totalorder %s38_s12, 0  ;;  %s1335_s10 = sshll.u32 %s1778_s19, 7 }
  0x3f   : > { %s217_s24 = scalar_lea.hbm %s2107_s0, %s1335_s10  ;;  %s212_s21 = scalar_lea.vmem [#allocation4], %s1334_s8 }
  0x40   : > { %s1940_s11 = scalar_select %p39_p10, %s1770_s17, %s41_s6  }
  0x41   : > { %s219_s22 = sshll.u32 %s212_s21, 4  ;;  %p1947_p2 = pnand %p1502_p5, %p50_p3  ;;  %s220_s22 = int_to_ptr.vmem [resolvable:$true] %s219_s22 }
  0x42   : > { %s209_s29 = scalar_lea.sflag [#allocation5], %s208_s9  ;;  %s1679_s5 = scalar_lea.vmem %s220_s22, 128 }
  0x43   : > { %p1668_p11 = pneg %p1947_p2  ;;  %p1680_p7 = scmp.ne.s32.totalorder %s220_s22, %s1679_s5 }
  0x44   : > { %s1789_s6 = smov [#allocation4]  }
  0x45   : > { %p1682_p6 = pnand %p1680_p7, %p1668_p11  ;;  %s1684_s12 = sshll.u32 %s1789_s6, 4  ;;  %s1685_s12 = int_to_ptr.vmem [resolvable:$false] %s1684_s12 }
  0x46   : > { %s1686_s10 = scalar_lea.vmem %s1685_s12, 256  ;;  %p1687_p13 = scmp.lt.s32.totalorder %s220_s22, %s1685_s12 }
  0x47   : > { %p1683_p9 = pneg %p1682_p6  ;;  %p1688_p1 = scmp.lt.s32.totalorder %s1686_s10, %s1679_s5 }
  0x49   : > { %p1689_p4 = por %p1688_p1, %p1687_p13 }
  0x4b   : > { %p1690_p8 = pnand %p1689_p4, %p1683_p9 }
  0x4d   : > { %1693 = shalt.err (!%p1690_p8)
}
  0x4e   : > { %1494 = dma.hbm_to_vmem [thread:$0]  (!%p1947_p2), %s217_s24, 128, %s220_s22, %s209_s29  }
  0x4f   : > { %p2124_p12 = scmp.ne.s32.totalorder %s2120_s27, 0 }
  0x50   : > { %s1958_s9 = sand.u32 (!%p2124_p12), 1, %s1766_s16   ;;  %p2125_p5 = scmp.ne.s32.totalorder (!%p2124_p12), %s2118_s25, 0 }
  0x51   : > { %228 = sbr.rel (%p2124_p12) target bundleno = 1459 (0x5b3), region = 36  ;;  %s1337_s8 = sshll.u32 (!%p2124_p12), %s1958_s9, 3 }
  0x52   : > { %s231_s13 = scalar_lea.sflag (!%p2124_p12), [#allocation5], %s1958_s9  ;;  %s234_s14 = scalar_lea.vmem (!%p2124_p12), [#allocation4], %s1337_s8 }
  0x56   : > { %1745 = dma.done.wait (%p2125_p5), %s231_s13, 128  }
  0x57   : > { %1747 = vsyncadd (%p2125_p5), %s231_s13, 4294967168  ;;  %p2126_p3 = scmp.ne.s32.totalorder %s2116_s23, 0 }
  0x59   : > { %1749 = dma.done.wait (%p2126_p3), [#allocation8], 1024  }
  0x5a   : > { %1751 = vsyncadd (%p2126_p3), [#allocation8], 4294966272 }
  0x5b   : > { %1753 = dma.done.wait (%p2126_p3), [#allocation11], 512  }
  0x5c   : > { %1755 = vsyncadd (%p2126_p3), [#allocation11], 4294966784  ;;  %v1790_v0 = vmov 0.0   ;;  %vm1791_vm0 = vmmov 0   ;;  %v279_v1 = vld [vmem:[#allocation9 + $0x18] sm:$0xff]  ;;  %v278_v2 = vld [vmem:[#allocation9 + $0x10] sm:$0xff] }
  0x5d   : > { %1392 = vmatprep.subr.mxu0 %v1790_v0  ;;  %1400 = vmatprep.mubr.msk.f32.mxu0 %vm1791_vm0, %v1790_v0  ;;  %v362_v3 = vld [vmem:[#allocation7 + $0x18] sm:$0xff]  ;;  %v277_v4 = vld [vmem:[#allocation9 + $0x8] sm:$0xff]  ;;  %v361_v5 = vld [vmem:[#allocation7 + $0x10] sm:$0xff]  ;;  %vm280_vm1 = vcmask 261120   ;;  %vm354_vm2 = vcmask 523264   ;;  %vm439_vm3 = vcmask 64512  }
  0x5e   : > { %1403 = vmatprep.subr.mxu1 %v1790_v0  ;;  %1411 = vmatprep.mubr.msk.f32.mxu1 %vm1791_vm0, %v1790_v0  ;;  %v360_v6 = vld [vmem:[#allocation7 + $0x8] sm:$0xff]  ;;  %v276_v7 = vld [vmem:[#allocation9] sm:$0xff]  ;;  %v275_v8 = vld [vmem:[%s234_s14] sm:$0xff]  ;;  %s1792_s23 = smov 112   ;;  %s1793_s25 = smov 120   ;;  %vm775_vm4 = vcmask 130112  }
  0x5f   : > { %1393 = vmatpush3.msra.mxu0 %v279_v1  ;;  %1404 = vmatpush3.msra.mxu1 %v362_v3  ;;  %v359_v9 = vld [vmem:[#allocation7] sm:$0xff]  ;;  %s1794_s27 = smov 104   ;;  %s1795_s24 = smov 96   ;;  %vm948_vm5 = vcmask 195712   ;;  %vm1121_vm6 = vcmask 261312  }
  0x60   : > { %1394 = vmatprep.subr.mxu0 %v1790_v0  ;;  %1405 = vmatprep.subr.mxu1 %v1790_v0  ;;  %s1796_s21 = smov 80   ;;  %s1797_s22 = smov 72  }
  0x61   : > { %1395 = vmatpush3.msra.mxu0 %v278_v2  ;;  %1406 = vmatpush3.msra.mxu1 %v361_v5  ;;  %s1798_s28 = smov 88   ;;  %s1799_s29 = smov 8  }
  0x62   : > { %1396 = vmatprep.subr.mxu0 %v1790_v0  ;;  %1407 = vmatprep.subr.mxu1 %v1790_v0  ;;  %s1800_s5 = smov 16   ;;  %s1801_s6 = smov 24  }
  0x63   : > { %1397 = vmatpush3.msra.mxu0 %v277_v4  ;;  %1408 = vmatpush3.msra.mxu1 %v360_v6  ;;  %s1358_s12 = sshll.u32 %s1774_s18, 7  ;;  %s270_s10 = scalar_lea.vmem [#allocation12], %s1337_s8 }
  0x64   : > { %1398 = vmatprep.subr.mxu0 %v1790_v0  ;;  %1409 = vmatprep.subr.mxu1 %v1790_v0  ;;  %s1217_s13 = sshll.u32 %s270_s10, 4  ;;  %s1802_s18 = smov [#allocation12]   ;;  %s2060_s13 = int_to_ptr.vmem [resolvable:$true] %s1217_s13 }
  0x65   : > { %1399 = vmatpush3.msra.mxu0 %v276_v7  ;;  %1410 = vmatpush3.msra.mxu1 %v359_v9  ;;  %v1127_v9 = vld [vmem:[#allocation10 + $0x18] sm:$0xff]  ;;  %s1698_s8 = sshll.u32 %s1802_s18, 4  ;;  %s1699_s8 = int_to_ptr.vmem [resolvable:$false] %s1698_s8 }
  0x66   : > { %1401 = vmatmul.mubr.msk.f32.vlgmr.msra.gmra.mxu0 %vm280_vm1, %v275_v8  ;;  %1412 = vmatmul.mubr.msk.f32.vlgmr.msra.gmra.mxu1 %vm280_vm1, %v275_v8  ;;  %p1701_p7 = scmp.lt.s32.totalorder %s2060_s13, %s1699_s8 }
  0x67   : > { %1414 = vmatprep.subr.mxu1 %v1790_v0  ;;  %1416 = vmatprep.mubr.msk.f32.mxu1 %vm1791_vm0, %v1790_v0 }
  0x68   : > { %1424 = vmatprep.subr.mxu0 %v1790_v0  ;;  %1426 = vmatprep.mubr.msk.f32.mxu0 %vm1791_vm0, %v1790_v0 }
 0x126   : > { %v350_v10 = vpop.f32.mrf.mxu0  ;;  %v433_v11 = vpop.f32.mrf.mxu1 }
 0x127   : > { %355 = vst.msk [vmem:[#allocation2] sm:$0xff] %vm354_vm2, %v350_v10  ;;  %v437_v15 = vmul.f32 4.0, %v433_v11  ;;  %v1126_v10 = vld [vmem:[#allocation10 + $0x10] sm:$0xff]  ;;  %v1125_v11 = vld [vmem:[#allocation10 + $0x8] sm:$0xff] }
 0x128   : > { %v1402_v12 = vpop.f32.mrf.mxu0  ;;  %v1413_v13 = vpop.f32.mrf.mxu1 }
 0x129   : > { %v1124_v13 = vld [vmem:[#allocation10] sm:$0xff] }
 0x12e   : > { %v1996_v14 = vld [vmem:[#allocation2] sm:$0xff] }
 0x12f   : > { %781 = vrot.lane.b32.xlu1 %v1996_v14, %s1792_s23  ;;  %608 = vrot.lane.b32.xlu0 %v1996_v14, %s1793_s25 }
 0x130   : > { %1415 = vmatpush3.xpose.msk.msra.mxu1 %vm439_vm3, %v1996_v14 }
 0x131   : > { %1419 = vmatprep.subr.mxu1 %v1790_v0 }
 0x133   : > { %1417 = vmatmul.mubr.msk.f32.vlgmr.msra.gmra.mxu1 %vm439_vm3, %v437_v15  ;;  %778 = vrot.lane.b32.xlu1 %v437_v15, %s1792_s23 }
 0x134   : > { %605 = vrot.lane.b32.xlu0 %v437_v15, %s1793_s25  ;;  %1421 = vmatprep.mubr.msk.f32.mxu1 %vm1791_vm0, %v1790_v0  ;;  %s2058_s25 = scalar_lea.hbm %s2111_s4, %s1358_s12 }
 0x137   : > { %951 = vrot.lane.b32.xlu1 %v437_v15, %s1794_s27 }
 0x138   : > { %954 = vrot.lane.b32.xlu0 %v1996_v14, %s1794_s27  ;;  %s1203_s27 = scalar_lea.sflag [#allocation6], %s1958_s9 }
 0x1a1   : > { %v609_v16 = vpop.permute.xlu0 %608  ;;  %v782_v17 = vpop.permute.xlu1 %781 }
 0x1a2   : > { %1425 = vmatpush3.xpose.msk.msra.mxu0 %vm439_vm3, %v609_v16 }
 0x1a3   : > { %1434 = vmatprep.subr.mxu0 %v1790_v0 }
 0x1a5   : > { %v779_v19 = vpop.permute.xlu1 %778 }
 0x1a6   : > { %v606_v18 = vpop.permute.xlu0 %605 }
 0x1a7   : > { %1427 = vmatmul.mubr.msk.f32.vlgmr.msra.gmra.mxu0 %vm439_vm3, %v606_v18 }
 0x1a8   : > { %1435 = vmatpush3.xpose.msk.msra.mxu0 %vm439_vm3, %v782_v17  ;;  %1436 = vmatprep.mubr.msk.f32.mxu0 %vm1791_vm0, %v1790_v0 }
 0x1a9   : > { %1444 = vmatprep.subr.mxu0 %v1790_v0  ;;  %v952_v21 = vpop.permute.xlu1 %951 }
 0x1aa   : > { %v955_v20 = vpop.permute.xlu0 %954 }
 0x1ab   : > { %1437 = vmatmul.mubr.msk.f32.vlgmr.msra.gmra.mxu0 %vm439_vm3, %v779_v19 }
 0x1ac   : > { %1445 = vmatpush3.xpose.msk.msra.mxu0 %vm439_vm3, %v955_v20  ;;  %1446 = vmatprep.mubr.msk.f32.mxu0 %vm1791_vm0, %v1790_v0 }
 0x1ad   : > { %1454 = vmatprep.subr.mxu0 %v1790_v0 }
 0x1af   : > { %1447 = vmatmul.mubr.msk.f32.vlgmr.msra.gmra.mxu0 %vm439_vm3, %v952_v21 }
 0x1b0   : > { %1462 = vmatprep.mubr.msk.f32.mxu0 %vm1791_vm0, %v1790_v0  ;;  %1455 = vmatpush3.msra.mxu0 %v1127_v9 }
 0x1b1   : > { %1456 = vmatprep.subr.mxu0 %v1790_v0 }
 0x1b2   : > { %1457 = vmatpush3.msra.mxu0 %v1126_v10 }
 0x1b3   : > { %1458 = vmatprep.subr.mxu0 %v1790_v0 }
 0x1b4   : > { %1459 = vmatpush3.msra.mxu0 %v1125_v11 }
 0x1b5   : > { %1460 = vmatprep.subr.mxu0 %v1790_v0 }
 0x1b6   : > { %1461 = vmatpush3.msra.mxu0 %v1124_v13 }
 0x1f3   : > { %v512_v22 = vpop.f32.mrf.mxu1 }
 0x1f4   : > { %v516_v23 = vsel %vm439_vm3, %v512_v22, -inf }
 0x1f5   : > { %517 = vmax.xlane.f32.xlu0 %v516_v23  ;;  %v1418_v24 = vpop.f32.mrf.mxu1 }
 0x267   : > { %v680_v25 = vpop.f32.mrf.mxu0 }
 0x268   : > { %v684_v26 = vsel %vm439_vm3, %v680_v25, -inf }
 0x269   : > { %685 = vmax.xlane.f32.xlu1 %v684_v26  ;;  %v1428_v27 = vpop.f32.mrf.mxu0 }
 0x26b   : > { %v853_v28 = vpop.f32.mrf.mxu0 }
 0x26c   : > { %v857_v29 = vsel %vm439_vm3, %v853_v28, -inf }
 0x26d   : > { %858 = vmax.xlane.f32.xlu0 %v857_v29  ;;  %v1438_v30 = vpop.f32.mrf.mxu0 }
 0x26f   : > { %v1026_v31 = vpop.f32.mrf.mxu0 }
 0x270   : > { %v1030_v32 = vsel %vm439_vm3, %v1026_v31, -inf }
 0x271   : > { %1031 = vmax.xlane.f32.xlu0 %v1030_v32  ;;  %v1448_v33 = vpop.f32.mrf.mxu0 }
 0x27a   : > { %527 = vrot.lane.b32.xlu1 %v1996_v14, %s1795_s24  ;;  %s1694_s24 = scalar_lea.vmem %s2060_s13, 128 }
 0x27b   : > { %p1695_p10 = scmp.ne.s32.totalorder %s2060_s13, %s1694_s24 }
 0x27d   : > { %p1696_p2 = pnand %p1695_p10, %p1928_p0 }
 0x27e   : > { %v518_v34 = vpop.xlane.xlu0 %517 }
 0x27f   : > { %v519_v35 = vsub.f32 %v512_v22, %v518_v34  ;;  %p1697_p11 = pneg %p1696_p2 }
 0x281   : > { %v520_v36 = vmul.f32 1.442695, %v519_v35 }
 0x283   : > { %1572 = vpow2.f32 %v520_v36 }
 0x290   : > { %v1573_v37 = vpop.eup %1572 }
 0x291   : > { %v522_v38 = vsel %vm439_vm3, %v1573_v37, 0.0 }
 0x29e   : > { %523 = vadd.xlane.f32.xlu1 %v522_v38 }
 0x2f2   : > { %v686_v39 = vpop.xlane.xlu1 %685 }
 0x2f3   : > { %v687_v40 = vsub.f32 %v680_v25, %v686_v39 }
 0x2f5   : > { %v688_v41 = vmul.f32 1.442695, %v687_v40 }
 0x2f6   : > { %v528_v42 = vpop.permute.xlu1 %527  ;;  %v859_v43 = vpop.xlane.xlu0 %858 }
 0x2f7   : > { %1574 = vpow2.f32 %v688_v41  ;;  %v860_v44 = vsub.f32 %v853_v28, %v859_v43  ;;  %1420 = vmatpush3.msra.mxu1 %v528_v42 }
 0x2f8   : > { %1429 = vmatprep.subr.mxu1 %v1790_v0 }
 0x2f9   : > { %v861_v45 = vmul.f32 1.442695, %v860_v44 }
 0x2fa   : > { %v1032_v46 = vpop.xlane.xlu0 %1031 }
 0x2fb   : > { %1576 = vpow2.f32 %v861_v45  ;;  %v1033_v47 = vsub.f32 %v1026_v31, %v1032_v46 }
 0x2fd   : > { %v1034_v48 = vmul.f32 1.442695, %v1033_v47 }
 0x2ff   : > { %1578 = vpow2.f32 %v1034_v48 }
 0x304   : > { %v1575_v49 = vpop.eup %1574 }
 0x305   : > { %v690_v50 = vsel %vm439_vm3, %v1575_v49, 0.0 }
 0x306   : > { %691 = vadd.xlane.f32.xlu0 %v690_v50 }
 0x308   : > { %v1577_v51 = vpop.eup %1576 }
 0x309   : > { %v863_v52 = vsel %vm439_vm3, %v1577_v51, 0.0 }
 0x30a   : > { %864 = vadd.xlane.f32.xlu1 %v863_v52 }
 0x30c   : > { %v1579_v53 = vpop.eup %1578 }
 0x30d   : > { %v1036_v54 = vsel %vm439_vm3, %v1579_v53, 0.0 }
 0x30e   : > { %1037 = vadd.xlane.f32.xlu0 %v1036_v54 }
 0x31b   : > { %868 = vrot.lane.b32.xlu1 %v1996_v14, %s1796_s21  ;;  %s1700_s21 = scalar_lea.vmem %s1699_s8, 256 }
 0x31c   : > { %p1702_p6 = scmp.lt.s32.totalorder %s1700_s21, %s1694_s24 }
 0x31e   : > { %p1703_p9 = por %p1702_p6, %p1701_p7 }
 0x31f   : > { %1041 = vrot.lane.b32.xlu1 %v1996_v14, %s1797_s22 }
 0x320   : > { %p1704_p13 = pnand %p1703_p9, %p1697_p11 }
 0x324   : > { %695 = vrot.lane.b32.xlu0 %v1996_v14, %s1798_s28 }
 0x327   : > { %v524_v55 = vpop.xlane.xlu1 %523 }
 0x328   : > { %1580 = vrcp.f32 %v524_v55 }
 0x335   : > { %v1581_v56 = vpop.eup %1580 }
 0x336   : > { %v526_v57 = vmul.f32 %v1581_v56, %v1573_v37 }
 0x338   : > { %1422 = vmatmul.mubr.msk.f32.vlgmr.msra.gmra.mxu1 %vm439_vm3, %v526_v57 }
 0x339   : > { %1431 = vmatprep.mubr.msk.f32.mxu1 %vm1791_vm0, %v1790_v0 }
 0x38f   : > { %v692_v58 = vpop.xlane.xlu0 %691 }
 0x390   : > { %1582 = vrcp.f32 %v692_v58 }
 0x393   : > { %v865_v59 = vpop.xlane.xlu1 %864 }
 0x394   : > { %1584 = vrcp.f32 %v865_v59 }
 0x397   : > { %v1038_v60 = vpop.xlane.xlu0 %1037  ;;  %v869_v63 = vpop.permute.xlu1 %868 }
 0x398   : > { %1586 = vrcp.f32 %v1038_v60 }
 0x39b   : > { %v696_v61 = vpop.permute.xlu0 %695  ;;  %v1042_v4 = vpop.permute.xlu1 %1041 }
 0x39c   : > { %1430 = vmatpush3.msra.mxu1 %v696_v61 }
 0x39d   : > { %v1583_v62 = vpop.eup %1582  ;;  %1439 = vmatprep.subr.mxu1 %v1790_v0 }
 0x39e   : > { %v694_v1 = vmul.f32 %v1583_v62, %v1575_v49 }
 0x3a0   : > { %1432 = vmatmul.mubr.msk.f32.vlgmr.msra.gmra.mxu1 %vm439_vm3, %v694_v1 }
 0x3a1   : > { %v1585_v2 = vpop.eup %1584  ;;  %1440 = vmatpush3.msra.mxu1 %v869_v63  ;;  %1441 = vmatprep.mubr.msk.f32.mxu1 %vm1791_vm0, %v1790_v0 }
 0x3a2   : > { %1449 = vmatprep.subr.mxu1 %v1790_v0  ;;  %v867_v3 = vmul.f32 %v1585_v2, %v1577_v51 }
 0x3a4   : > { %1442 = vmatmul.mubr.msk.f32.vlgmr.msra.gmra.mxu1 %vm439_vm3, %v867_v3 }
 0x3a5   : > { %v1587_v5 = vpop.eup %1586  ;;  %1450 = vmatpush3.msra.mxu1 %v1042_v4  ;;  %1451 = vmatprep.mubr.msk.f32.mxu1 %vm1791_vm0, %v1790_v0 }
 0x3a6   : > { %v1040_v6 = vmul.f32 %v1587_v5, %v1579_v53 }
 0x3a8   : > { %1452 = vmatmul.mubr.msk.f32.vlgmr.msra.gmra.mxu1 %vm439_vm3, %v1040_v6 }
 0x3f8   : > { %v599_v7 = vpop.f32.mrf.mxu1 }
 0x3f9   : > { %603 = vst.msk [vmem:[#allocation3] sm:$0xff] %vm439_vm3, %v599_v7 }
 0x3fa   : > { %v1423_v8 = vpop.f32.mrf.mxu1 }
 0x460   : > { %v767_v12 = vpop.f32.mrf.mxu1 }
 0x461   : > { %772 = vrot.lane.b32.xlu0 %v767_v12, %s1799_s29 }
 0x462   : > { %v1433_v14 = vpop.f32.mrf.mxu1 }
 0x464   : > { %v940_v15 = vpop.f32.mrf.mxu1 }
 0x465   : > { %945 = vrot.lane.b32.xlu1 %v940_v15, %s1800_s5 }
 0x466   : > { %v1443_v16 = vpop.f32.mrf.mxu1 }
 0x468   : > { %v1113_v17 = vpop.f32.mrf.mxu1 }
 0x469   : > { %1118 = vrot.lane.b32.xlu0 %v1113_v17, %s1801_s6 }
 0x46a   : > { %v1453_v18 = vpop.f32.mrf.mxu1 }
 0x4d3   : > { %v773_v19 = vpop.permute.xlu0 %772 }
 0x4d4   : > { %776 = vst.msk [vmem:[#allocation3] sm:$0xff] %vm775_vm4, %v773_v19 }
 0x4d7   : > { %v946_v20 = vpop.permute.xlu1 %945 }
 0x4d8   : > { %949 = vst.msk [vmem:[#allocation3] sm:$0xff] %vm948_vm5, %v946_v20 }
 0x4db   : > { %v1119_v0 = vpop.permute.xlu0 %1118 }
 0x4dc   : > { %1122 = vst.msk [vmem:[#allocation3] sm:$0xff] %vm1121_vm6, %v1119_v0 }
 0x4e3   : > { %v1123_v21 = vld [vmem:[#allocation3] sm:$0xff] }
 0x4e4   : > { %1463 = vmatmul.mubr.msk.f32.vlgmr.msra.gmra.mxu0 %vm280_vm1, %v1123_v21 }
 0x5a4   : > { %v1197_v22 = vpop.f32.mrf.mxu0 }
 0x5a5   : > { %1201 = vst.msk [vmem:[%s270_s10] sm:$0xff] %vm280_vm1, %v1197_v22 }
 0x5a6   : > { %v1464_v23 = vpop.f32.mrf.mxu0 }
 0x5a7   : > { %1707 = shalt.err (!%p1704_p13)
}
 0x5a8   : > { %s1708_s22 = scalar_lea.hbm %s2058_s25, 128  ;;  %s1712_s29 = scalar_lea.hbm %s2111_s4, 256 }
 0x5a9   : > { %p1709_p1 = scmp.ne.s32.totalorder %s2058_s25, %s1708_s22  ;;  %p1713_p12 = scmp.lt.s32.totalorder %s2058_s25, %s2111_s4 }
 0x5aa   : > { %p1714_p5 = scmp.lt.s32.totalorder %s1712_s29, %s1708_s22 }
 0x5ab   : > { %p1710_p4 = pnand %p1709_p1, %p1928_p0 }
 0x5ac   : > { %p1715_p3 = por %p1714_p5, %p1713_p12 }
 0x5ad   : > { %p1711_p8 = pneg %p1710_p4 }
 0x5af   : > { %p1716_p10 = pnand %p1715_p3, %p1711_p8 }
 0x5b1   : > { %1719 = shalt.err (!%p1716_p10)
}
 0x5b2   : > { %1479 = dma.vmem_to_hbm [thread:$0]  (%p1928_p0), %s2060_s13, 128, %s2058_s25, %s1203_s27  }
 0x5b3 PF: > { %s1229_s12 = sand.u32 1, %s1762_s15   ;;  %p2127_p2 = scmp.ne.s32.totalorder %s2119_s26, 0 }
 0x5b4   : > { %p2128_p11 = scmp.ge.s32.totalorder %s1782_s20, 2  ;;  %s1230_s10 = scalar_lea.sflag [#allocation6], %s1229_s12 }
 0x5b6   : > { %p1496_p7 = pnand %p2128_p11, %p2127_p2 }
 0x5b8   : > { %p1497_p6 = pneg %p1496_p7 }
 0x5ba   : > { %1757 = dma.done.wait (%p1497_p6), %s1230_s10, 128  }
 0x5bb   : > { %1759 = vsyncadd (%p1497_p6), %s1230_s10, 4294967168  ;;  %s22_s20 = sadd.s32 1, %s1782_s20   ;;  %s2129_s15 = smov %s1766_s16 }
 0x5bc   : > { %p19_p9 = scmp.ge.s32.totalorder %s22_s20, 4   ;;  %s2130_s16 = smov %s1770_s17 }
 0x5bd   : > { %s2131_s17 = smov %s1940_s11  ;;  %s2132_s18 = smov %s1778_s19 }
 0x5be   : > { %s2133_s19 = smov %s2135_s7  ;;  %21 = sbr.rel (!%p19_p9) target bundleno = 8 (0x8), region = 98 }
 0x5c3   :  { %1235 = vsyncpa [#allocation5], 1 }
 0x5c4   :  { %1237 = vsyncpa [#allocation5 + $0x1], 1 }
 0x5c5   :  { %1238 = vsyncpa [#allocation8], 1 }
 0x5c6   :  { %1239 = vsyncpa [#allocation11], 1 }
 0x5c7   :  { %1240 = vsyncpa [#allocation6], 1 }
 0x5c8   :  { %1242 = vsyncpa [#allocation6 + $0x1], 1 }

</bundles_post_ra>
